<compile_context>
chip_gen: v6e
topology: v6e:2x2x1
jax: 0.10.0
libtpu: 0.0.40
codegen_flags: <defaults>
</compile_context>

<pallas_src>
import functools

import jax
import jax.numpy as jnp
from jax import lax
from jax.experimental import pallas as pl
from jax.experimental.pallas import tpu as pltpu


def _round_up(x, m):
    return -(-x // m) * m


def _cdiv(a, b):
    return -(-a // b)


# Conservative VMEM budget for the pipeline buffers: fits every generation
# (v5e/v6e: 128 MiB physical, v7x: 64 MiB physical / 32 MiB scoped default).
_VMEM_BUDGET = 36 << 20


# ----------------------------------------------------------------------------
# Kernel
# ----------------------------------------------------------------------------
def _mle_kernel(feat_ref, w_ref, b_ref, out_ref, acc_ref, *,
                n_heads, emb_pad, normalize, reduce_mean):
    k = pl.program_id(1)

    @pl.when(k == 0)
    def _():
        acc_ref[...] = jnp.zeros_like(acc_ref)

    # One lane-dense MXU matmul covering every head: (TB, TK) @ (TK, H*Ep),
    # bf16 operands, f32 accumulation.
    acc_ref[...] += jnp.dot(feat_ref[...], w_ref[...],
                            preferred_element_type=jnp.float32)

    @pl.when(k == pl.num_programs(1) - 1)
    def _():
        y = acc_ref[...] + b_ref[...]                        # (TB, H*Ep) f32
        acc = None
        for h in range(n_heads):                             # static, small H
            yh = y[:, h * emb_pad:(h + 1) * emb_pad]         # 128-aligned slice
            if normalize:
                # F.normalize(p=2, dim=2, eps=1e-12); rsqrt lowers to the EUP.
                ss = jnp.sum(yh * yh, axis=-1, keepdims=True)
                yh = yh * lax.rsqrt(jnp.maximum(ss, 1e-24))
            if reduce_mean:
                acc = yh if acc is None else acc + yh
            else:
                # stacked (training) output, kept lane-dense as (TB, H*Ep)
                out_ref[:, h * emb_pad:(h + 1) * emb_pad] = yh.astype(out_ref.dtype)
        if reduce_mean:
            out_ref[...] = (acc * (1.0 / n_heads)).astype(out_ref.dtype)


# ----------------------------------------------------------------------------
# Tiling plan (explicit VMEM budget -> works on v5e / v6e / v7x)
# ----------------------------------------------------------------------------
def _choose_tk(f_dim, max_tk):
    """Largest K tile <= max_tk that is a multiple of 128 and divides f_dim.
    The reduction axis must tile exactly (OOB reads would pollute the sum)."""
    if f_dim <= max_tk:
        return f_dim
    t = (max_tk // 128) * 128
    while t >= 128:
        if f_dim % t == 0:
            return t
        t -= 128
    return f_dim  # no clean 128-multiple divisor; fall back to one big K block


def _plan_tiles(b_sz, f_dim, he_pad, out_w, *, block_b=512, block_k=None):
    # --- K axis: keep the bf16 weight slab (double-buffered only when K is
    #     actually tiled) inside ~half of the VMEM budget.
    max_tk = max(128, (_VMEM_BUDGET // 2) // (2 * he_pad * 2))
    if block_k is not None:
        max_tk = min(max_tk, max(128, block_k))
    tk = _choose_tk(f_dim, max_tk)
    nk = _cdiv(f_dim, tk)
    w_bufs = 1 if nk == 1 else 2
    fixed = w_bufs * tk * he_pad * 2 + he_pad * 4            # weights + bias

    # --- Batch axis: 2 bf16 feat bufs + 2 f32 out bufs + f32 accumulator / row.
    per_row = 2 * tk * 2 + 2 * out_w * 4 + he_pad * 4
    tb_cap = max(8, (_VMEM_BUDGET - fixed) // per_row)
    tb_cap = int(min(tb_cap, block_b))

    if b_sz <= max(16, min(tb_cap, 32)):
        tb = b_sz                      # one full-batch block (block == full dim)
    else:
        # >=2 batch tiles so the "parallel" axis shards across v7x's 2 cores,
        # multiple of 16 (bf16 sublane packing), minimal overshoot — no
        # host-side jnp.pad, the last tile is ragged (masked output stores).
        n_tiles = max(_cdiv(b_sz, tb_cap), 2)
        tb = max(16, min(_round_up(_cdiv(b_sz, n_tiles), 16), tb_cap))
    nb = _cdiv(b_sz, tb)

    vmem_bytes = fixed + tb * per_row
    return tb, tk, nb, nk, w_bufs, vmem_bytes


# ----------------------------------------------------------------------------
# Parameter fold (done ONCE at parameter-creation time, not per forward)
# ----------------------------------------------------------------------------
def fold_mle_params(weights, biases, *, compute_dtype=jnp.bfloat16):
    """weights: (H, output_size, E)  (stacked nn.Linear weights, x@W layout)
       biases : (H, E)
    Returns lane-dense (F, H*Ep) compute_dtype weight, (1, H*Ep) f32 bias, and
    static shape info. Each head's E columns are zero-padded to a 128-lane
    boundary so per-head slices in the kernel stay vreg-aligned."""
    n_heads, f_dim, emb = weights.shape
    emb_pad = _round_up(emb, 128)
    w = jnp.transpose(weights.astype(jnp.float32), (1, 0, 2))    # (F, H, E)
    b = biases.astype(jnp.float32)                               # (H, E)
    if emb_pad != emb:
        w = jnp.pad(w, ((0, 0), (0, 0), (0, emb_pad - emb)))
        b = jnp.pad(b, ((0, 0), (0, emb_pad - emb)))
    w2 = w.reshape(f_dim, n_heads * emb_pad).astype(compute_dtype)
    b2 = b.reshape(1, n_heads * emb_pad)
    return w2, b2, (n_heads, emb, emb_pad, f_dim)


# ----------------------------------------------------------------------------
# Forward
# ----------------------------------------------------------------------------
def multiple_linear_embedding_forward(x, folded_params, *, normalize=True,
                                      training=False, branch=None,
                                      block_b=512, block_k=None):
    """x: output of `base` (any shape with leading batch dim).
    `branch` must be a static Python int (weights are sliced at trace time)."""
    w2, b2, (n_heads, emb, emb_pad, f_dim) = folded_params
    b_sz = x.shape[0]

    # TODO(synk): self.base is an arbitrary user-supplied backbone (not specified
    # in the module); it is treated as identity here — the kernel consumes
    # base(input).view(B, -1) directly.
    feat = x.reshape(b_sz, -1)
    assert feat.shape[1] == f_dim, (feat.shape, f_dim)
    feat = feat.astype(w2.dtype)      # bf16 MXU operands; accumulation stays f32

    if branch is not None:
        branch = int(branch)          # static check: traced branch is unsupported
        w2 = w2[:, branch * emb_pad:(branch + 1) * emb_pad]
        b2 = b2[:, branch * emb_pad:(branch + 1) * emb_pad]
        n_heads = 1
    reduce_mean = (branch is not None) or (not training)

    if reduce_mean and (not normalize) and n_heads > 1:
        # Mean over heads commutes with the (affine) heads: fold it into the
        # weights -> single (F, Ep) matmul (H x fewer FLOPs and weight bytes).
        w2 = (w2.astype(jnp.float32).reshape(f_dim, n_heads, emb_pad)
                 .mean(axis=1).astype(w2.dtype))
        b2 = b2.reshape(n_heads, emb_pad).mean(axis=0, keepdims=True)
        n_heads = 1

    he_pad = n_heads * emb_pad
    out_w = emb_pad if reduce_mean else he_pad
    tb, tk, nb, nk, w_bufs, vmem_bytes = _plan_tiles(
        b_sz, f_dim, he_pad, out_w, block_b=block_b, block_k=block_k)

    kern = functools.partial(_mle_kernel, n_heads=n_heads, emb_pad=emb_pad,
                             normalize=normalize, reduce_mean=reduce_mean)

    # Grid-invariant operands get a single VMEM buffer (no wasted double buffer).
    w_mode = pl.Buffered(1) if w_bufs == 1 else None
    vmem_limit = int(max(32 << 20, min(vmem_bytes + (16 << 20), 100 << 20)))

    out = pl.pallas_call(
        kern,
        out_shape=jax.ShapeDtypeStruct((b_sz, out_w), jnp.float32),
        grid_spec=pltpu.PrefetchScalarGridSpec(
            num_scalar_prefetch=0,
            grid=(nb, nk),
            in_specs=[
                pl.BlockSpec((tb, tk), lambda i, k: (i, k)),
                pl.BlockSpec((tk, he_pad), lambda i, k: (k, 0),
                             pipeline_mode=w_mode),
                pl.BlockSpec((1, he_pad), lambda i, k: (0, 0),
                             pipeline_mode=pl.Buffered(1)),
            ],
            out_specs=pl.BlockSpec((tb, out_w), lambda i, k: (i, 0)),
            scratch_shapes=[pltpu.VMEM((tb, he_pad), jnp.float32)],
        ),
        compiler_params=pltpu.CompilerParams(
            dimension_semantics=("parallel", "arbitrary"),
            vmem_limit_bytes=vmem_limit),
    )(feat, w2, b2)

    if reduce_mean:
        return out[:, :emb] if emb_pad != emb else out            # (B, E)
    out = out.reshape(b_sz, n_heads, emb_pad)
    return out[:, :, :emb] if emb_pad != emb else out             # (B, H, E)


# ----------------------------------------------------------------------------
# Pure-JAX reference mirroring the PyTorch forward
# ----------------------------------------------------------------------------
def mle_reference(x, weights, biases, *, normalize=True, training=False, branch=None):
    b_sz = x.shape[0]
    feat = x.reshape(b_sz, -1).astype(jnp.float32)
    embed = jnp.einsum("bf,hfe->bhe", feat, weights.astype(jnp.float32),
                       precision=lax.Precision.HIGHEST) + biases[None].astype(jnp.float32)
    if normalize:
        nrm = jnp.linalg.norm(embed, axis=2, keepdims=True)
        embed = embed / jnp.maximum(nrm, 1e-12)
    if branch is not None:
        return embed[:, branch]
    if training:
        return embed
    return embed.mean(axis=1)


if __name__ == "__main__":
    # base(input) assumed to be a (B, C, H, W) feature map -> output_size = C*H*W
    B, C, Hs, Ws = 8, 4, 16, 16
    output_size = C * Hs * Ws                   # 1024
    embedding_size = [128, 128]                 # two heads (torch.stack needs equal sizes)
    n_heads, emb = len(embedding_size), embedding_size[0]

    key = jax.random.PRNGKey(0)
    kx, kw, kb, kx2 = jax.random.split(key, 4)
    x = jax.random.normal(kx, (B, C, Hs, Ws), jnp.float32)
    bound = 1.0 / (output_size ** 0.5)          # nn.Linear default uniform init
    weights = jax.random.uniform(kw, (n_heads, output_size, emb), jnp.float32,
                                 -bound, bound)
    biases = jax.random.uniform(kb, (n_heads, emb), jnp.float32, -bound, bound)

    # One-time lane-dense bf16 fold of all heads (parameter-creation time).
    params = fold_mle_params(weights, biases)

    # eval path (default): normalized per-head embeddings, mean over heads
    out_eval = jax.block_until_ready(
        multiple_linear_embedding_forward(x, params, normalize=True))
    ref_eval = mle_reference(x, weights, biases, normalize=True)
    assert out_eval.shape == (B, emb), out_eval.shape
    assert bool(jnp.all(jnp.isfinite(out_eval)))
    assert bool(jnp.allclose(out_eval, ref_eval, atol=2e-2, rtol=2e-2))

    # training path: stacked (B, H, E) embeddings
    out_train = jax.block_until_ready(
        multiple_linear_embedding_forward(x, params, normalize=True, training=True))
    ref_train = mle_reference(x, weights, biases, normalize=True, training=True)
    assert out_train.shape == (B, n_heads, emb), out_train.shape
    assert bool(jnp.allclose(out_train, ref_train, atol=2e-2, rtol=2e-2))
    norms = jnp.linalg.norm(out_train, axis=2)
    assert bool(jnp.all(jnp.abs(norms - 1.0) < 1e-3)), norms     # unit rows

    # branch path: single selected head
    out_b = jax.block_until_ready(
        multiple_linear_embedding_forward(x, params, normalize=True, branch=1))
    ref_b = mle_reference(x, weights, biases, normalize=True, branch=1)
    assert out_b.shape == (B, emb), out_b.shape
    assert bool(jnp.allclose(out_b, ref_b, atol=2e-2, rtol=2e-2))

    # eval without normalize: exercises the head-mean -> weight-fold fast path
    out_nn = jax.block_until_ready(
        multiple_linear_embedding_forward(x, params, normalize=False))
    ref_nn = mle_reference(x, weights, biases, normalize=False)
    assert out_nn.shape == (B, emb), out_nn.shape
    assert bool(jnp.allclose(out_nn, ref_nn, atol=2e-2, rtol=2e-2))

    # bigger, non-divisible batch + forced K-tiling: exercises the ragged last
    # batch tile (no host-side pad) and the accumulator grid axis.
    B2 = 40
    x2 = jax.random.normal(kx2, (B2, C, Hs, Ws), jnp.float32)
    out_big = jax.block_until_ready(
        multiple_linear_embedding_forward(x2, params, normalize=True, training=True,
                                          block_b=32, block_k=512))
    ref_big = mle_reference(x2, weights, biases, normalize=True, training=True)
    assert out_big.shape == (B2, n_heads, emb), out_big.shape
    assert bool(jnp.allclose(out_big, ref_big, atol=2e-2, rtol=2e-2))

    print("KERNEL_OK")
</pallas_src>

<mosaic_0001>
module attributes {stable_mosaic.version = 11 : i64} {
  func.func @_mle_kernel(%arg0: i32, %arg1: i32, %arg2: memref<8x1024xbf16, #tpu.memory_space<vmem>>, %arg3: memref<1024x256xbf16, #tpu.memory_space<vmem>>, %arg4: memref<1x256xf32, #tpu.memory_space<vmem>>, %arg5: memref<8x128xf32, #tpu.memory_space<vmem>>, %arg6: memref<8x256xf32, #tpu.memory_space<vmem>>) attributes {dimension_semantics = [#tpu.dimension_semantics<parallel>, #tpu.dimension_semantics<arbitrary>], iteration_bounds = array<i64: 1, 1>, scalar_prefetch = 0 : i64, scratch_operands = 1 : i64, tpu.core_type = #tpu.core_type<tc>, window_params = [{transform_indices = @transform_0, window_bounds = array<i64: 8, 1024>}, {pipeline_mode = #tpu.pipeline_mode<synchronous>, transform_indices = @transform_1, window_bounds = array<i64: 1024, 256>}, {pipeline_mode = #tpu.pipeline_mode<synchronous>, transform_indices = @transform_2, window_bounds = array<i64: 1, 256>}, {transform_indices = @transform_3, window_bounds = array<i64: 8, 128>}]} {
    %c0_i32 = arith.constant 0 : i32
    %0 = arith.cmpi eq, %arg1, %c0_i32 : i32
    %1 = arith.extui %0 : i1 to i32
    %c0_i32_0 = arith.constant 0 : i32
    %2 = arith.cmpi ne, %1, %c0_i32_0 : i32
    scf.if %2 {
      %cst_10 = arith.constant 0.000000e+00 : f32
      %12 = vector.broadcast %cst_10 : f32 to vector<8x256xf32>
      %c0_11 = arith.constant 0 : index
      %c0_12 = arith.constant 0 : index
      %13 = vector.load %arg6[%c0_11, %c0_12] : memref<8x256xf32, #tpu.memory_space<vmem>>, vector<8x256xf32>
      tpu.vector_store %arg6[%c0_11, %c0_12], %12 {strides = array<i32>} : memref<8x256xf32, #tpu.memory_space<vmem>>, vector<8x256xf32>,
    } else {
    }
    %c0 = arith.constant 0 : index
    %c0_1 = arith.constant 0 : index
    %3 = vector.load %arg6[%c0, %c0_1] : memref<8x256xf32, #tpu.memory_space<vmem>>, vector<8x256xf32>
    %c0_2 = arith.constant 0 : index
    %c0_3 = arith.constant 0 : index
    %4 = vector.load %arg2[%c0_2, %c0_3] : memref<8x1024xbf16, #tpu.memory_space<vmem>>, vector<8x1024xbf16>
    %c0_4 = arith.constant 0 : index
    %c0_5 = arith.constant 0 : index
    %5 = vector.load %arg3[%c0_4, %c0_5] : memref<1024x256xbf16, #tpu.memory_space<vmem>>, vector<1024x256xbf16>
    %cst = arith.constant dense<0.000000e+00> : vector<8x256xf32>
    %6 = tpu.matmul %4, %5, %cst {dimension_numbers = #tpu.dot_dimension_numbers<[1], [0], [0], [1], [0, 0, 1, 1], [], []>} : vector<8x1024xbf16>, vector<1024x256xbf16>, vector<8x256xf32> -> vector<8x256xf32>
    %7 = arith.addf %3, %6 : vector<8x256xf32>
    %c0_6 = arith.constant 0 : index
    %c0_7 = arith.constant 0 : index
    %8 = vector.load %arg6[%c0_6, %c0_7] : memref<8x256xf32, #tpu.memory_space<vmem>>, vector<8x256xf32>
    tpu.vector_store %arg6[%c0_6, %c0_7], %7 {strides = array<i32>} : memref<8x256xf32, #tpu.memory_space<vmem>>, vector<8x256xf32>,
    %c0_i32_8 = arith.constant 0 : i32
    %9 = arith.cmpi eq, %arg1, %c0_i32_8 : i32
    %10 = arith.extui %9 : i1 to i32
    %c0_i32_9 = arith.constant 0 : i32
    %11 = arith.cmpi ne, %10, %c0_i32_9 : i32
    scf.if %11 {
      %c0_10 = arith.constant 0 : index
      %c0_11 = arith.constant 0 : index
      %12 = vector.load %arg6[%c0_10, %c0_11] : memref<8x256xf32, #tpu.memory_space<vmem>>, vector<8x256xf32>
      %c0_12 = arith.constant 0 : index
      %c0_13 = arith.constant 0 : index
      %13 = vector.load %arg4[%c0_12, %c0_13] : memref<1x256xf32, #tpu.memory_space<vmem>>, vector<1x256xf32>
      %14 = vector.broadcast %13 : vector<1x256xf32> to vector<8x256xf32>
      %15 = arith.addf %12, %14 : vector<8x256xf32>
      %16 = vector.extract_strided_slice %15 {offsets = [0, 0], sizes = [8, 128], strides = [1, 1]} : vector<8x256xf32> to vector<8x128xf32>
      %17 = arith.mulf %16, %16 : vector<8x128xf32>
      %cst_14 = arith.constant dense<0.000000e+00> : vector<8xf32>
      %18 = vector.multi_reduction <add>, %17, %cst_14 [1] : vector<8x128xf32> to vector<8xf32>
      %19 = vector.shape_cast %18 : vector<8xf32> to vector<8x1xf32>
      %cst_15 = arith.constant 1.000000e-24 : f32
      %20 = vector.broadcast %cst_15 : f32 to vector<8x1xf32>
      %21 = arith.maximumf %19, %20 : vector<8x1xf32>
      %22 = math.rsqrt %21 : vector<8x1xf32>
      %23 = vector.broadcast %22 : vector<8x1xf32> to vector<8x128xf32>
      %24 = arith.mulf %16, %23 : vector<8x128xf32>
      %25 = vector.extract_strided_slice %15 {offsets = [0, 128], sizes = [8, 128], strides = [1, 1]} : vector<8x256xf32> to vector<8x128xf32>
      %26 = arith.mulf %25, %25 : vector<8x128xf32>
      %cst_16 = arith.constant dense<0.000000e+00> : vector<8xf32>
      %27 = vector.multi_reduction <add>, %26, %cst_16 [1] : vector<8x128xf32> to vector<8xf32>
      %28 = vector.shape_cast %27 : vector<8xf32> to vector<8x1xf32>
      %cst_17 = arith.constant 1.000000e-24 : f32
      %29 = vector.broadcast %cst_17 : f32 to vector<8x1xf32>
      %30 = arith.maximumf %28, %29 : vector<8x1xf32>
      %31 = math.rsqrt %30 : vector<8x1xf32>
      %32 = vector.broadcast %31 : vector<8x1xf32> to vector<8x128xf32>
      %33 = arith.mulf %25, %32 : vector<8x128xf32>
      %34 = arith.addf %24, %33 : vector<8x128xf32>
      %cst_18 = arith.constant 5.000000e-01 : f32
      %35 = vector.broadcast %cst_18 : f32 to vector<8x128xf32>
      %36 = arith.mulf %34, %35 : vector<8x128xf32>
      %c0_19 = arith.constant 0 : index
      %c0_20 = arith.constant 0 : index
      %37 = vector.load %arg5[%c0_19, %c0_20] : memref<8x128xf32, #tpu.memory_space<vmem>>, vector<8x128xf32>
      tpu.vector_store %arg5[%c0_19, %c0_20], %36 {strides = array<i32>} : memref<8x128xf32, #tpu.memory_space<vmem>>, vector<8x128xf32>,
    } else {
    }
    return
  }
  func.func @transform_0(%arg0: i32, %arg1: i32) -> (i32, i32) {
    %c0_i32 = arith.constant 0 : i32
    return %arg0, %arg1 : i32, i32
  }
  func.func @transform_1(%arg0: i32, %arg1: i32) -> (i32, i32) {
    %c0_i32 = arith.constant 0 : i32
    %c0_i32_0 = arith.constant 0 : i32
    return %arg1, %c0_i32 : i32, i32
  }
  func.func @transform_2(%arg0: i32, %arg1: i32) -> (i32, i32) {
    %c0_i32 = arith.constant 0 : i32
    %c0_i32_0 = arith.constant 0 : i32
    %c0_i32_1 = arith.constant 0 : i32
    return %c0_i32, %c0_i32_0 : i32, i32
  }
  func.func @transform_3(%arg0: i32, %arg1: i32) -> (i32, i32) {
    %c0_i32 = arith.constant 0 : i32
    %c0_i32_0 = arith.constant 0 : i32
    return %arg0, %c0_i32 : i32, i32
  }
}

</mosaic_0001>

<bundles_post_ra>
// kernel: tpu_custom_call.1
= control target key start
LH: loop header
LB: loop body
LE: loop exit
PB: predicated region body
PF: predicated region fallthrough
CT: control target
= control target key end

     0   :  { %8 = vsyncpa [#allocation4], 0  ;;  %s1527_s0 = inlined_call_operand.hbm [shape: bf16[8,1024], index: 0, kind: input, shape index: {}]   ;;  %s1528_s1 = inlined_call_operand.hbm [shape: bf16[1024,256], index: 1, kind: input, shape index: {}]   ;;  %s1529_s2 = inlined_call_operand.vmem [shape: f32[1,256], index: 2, kind: input, shape index: {}]   ;;  %s1530_s3 = inlined_call_operand.hbm [shape: f32[8,128], index: 3, kind: output, shape index: {}]  }
   0x1   :  { %9 = vsyncpa [#allocation7], 0 }
   0x2   :  { %10 = vsyncpa [#allocation5], 0  ;;  %s1478_s12 = smov [#allocation3]   ;;  %s1479_s14 = smov [#allocation6]  }
   0x3   :  { %s17_s13 = sshll.u32 %s1478_s12, 4  ;;  %s26_s15 = sshll.u32 %s1479_s14, 4  ;;  %s18_s13 = int_to_ptr.vmem [resolvable:$true] %s17_s13  ;;  %s27_s15 = int_to_ptr.vmem [resolvable:$true] %s26_s15 }
   0x4   :  { %s1420_s16 = scalar_lea.vmem %s18_s13, 512  ;;  %p1425_p1 = scmp.lt.s32.totalorder %s18_s13, %s18_s13 }
   0x5   :  { %p1421_p0 = scmp.ne.s32.totalorder %s18_s13, %s1420_s16  ;;  %p1426_p2 = scmp.lt.s32.totalorder %s1420_s16, %s1420_s16 }
   0x7   :  { %p1427_p3 = por %p1426_p2, %p1425_p1 }
   0x9   :  { %p1428_p4 = pnand %p1427_p3, %p1421_p0 }
   0xb   :  { %1431 = shalt.err (!%p1428_p4)
}
   0xc   :  { %20 = dma.hbm_to_vmem [thread:$0]  %s1527_s0, 512, %s18_s13, [#allocation4]  }
   0xd   :  { %s1440_s19 = scalar_lea.vmem %s27_s15, 16384  ;;  %p1445_p6 = scmp.lt.s32.totalorder %s27_s15, %s27_s15 }
   0xe   :  { %p1441_p5 = scmp.ne.s32.totalorder %s27_s15, %s1440_s19  ;;  %p1446_p7 = scmp.lt.s32.totalorder %s1440_s19, %s1440_s19 }
  0x10   :  { %p1447_p8 = por %p1446_p7, %p1445_p6 }
  0x12   :  { %p1448_p9 = pnand %p1447_p8, %p1441_p5 }
  0x14   :  { %1451 = shalt.err (!%p1448_p9)
}
  0x15   :  { %s1480_s20 = smov 128   ;;  %s1481_s21 = smov 8  }
  0x16   :  { %32 = dma.hbm_to_vmem [thread:$0]  %s1528_s1, 16384, %s27_s15, [#allocation7], %s1480_s20, %s1480_s20, %s1481_s21  }
  0x17   :  { %1472 = dma.done.wait [#allocation4], 512  }
  0x18   :  { %1473 = vsyncadd [#allocation4], 4294966784 }
  0x19   :  { %1474 = dma.done.wait [#allocation7], 16384  }
  0x1a   :  { %1475 = vsyncadd [#allocation7], 4294950912  ;;  %v1208_v0 = vld [vmem:[#allocation6 + $0x74] ss:$8 sps:$4 sm:$0xff]   ;;  %v1212_v2 = vld [vmem:[#allocation6 + $0x70] ss:$8 sps:$4 sm:$0xff]  }
  0x1b   :  { %v1210_v1 = vld [vmem:[#allocation6 + $0x174] ss:$8 sps:$4 sm:$0xff]   ;;  %849 = vmatprep.subr.bf16.mxu0 %v1208_v0  ;;  %v1213_v3 = vld [vmem:[#allocation6 + $0x170] ss:$8 sps:$4 sm:$0xff]   ;;  %v1214_v4 = vld [vmem:[#allocation6 + $0x64] ss:$8 sps:$4 sm:$0xff]  }
  0x1c   :  { %890 = vmatprep.subr.bf16.mxu1 %v1210_v1  ;;  %850 = vmatpush1.bf16.msra.mxu0 %v1212_v2  ;;  %v1216_v5 = vld [vmem:[#allocation6 + $0x164] ss:$8 sps:$4 sm:$0xff]   ;;  %v1218_v6 = vld [vmem:[#allocation6 + $0x60] ss:$8 sps:$4 sm:$0xff]   ;;  %v1220_v8 = vld [vmem:[#allocation6 + $0x54] ss:$8 sps:$4 sm:$0xff]  }
  0x1d   :  { %891 = vmatpush1.bf16.msra.mxu1 %v1213_v3  ;;  %851 = vmatprep.subr.bf16.mxu0 %v1214_v4  ;;  %v1219_v7 = vld [vmem:[#allocation6 + $0x160] ss:$8 sps:$4 sm:$0xff]   ;;  %v1222_v9 = vld [vmem:[#allocation6 + $0x154] ss:$8 sps:$4 sm:$0xff]   ;;  %v1224_v10 = vld [vmem:[#allocation6 + $0x50] ss:$8 sps:$4 sm:$0xff]  }
  0x1e   :  { %892 = vmatprep.subr.bf16.mxu1 %v1216_v5  ;;  %v1225_v11 = vld [vmem:[#allocation6 + $0x150] ss:$8 sps:$4 sm:$0xff]   ;;  %v1226_v12 = vld [vmem:[#allocation6 + $0x44] ss:$8 sps:$4 sm:$0xff]   ;;  %v1230_v14 = vld [vmem:[#allocation6 + $0x40] ss:$8 sps:$4 sm:$0xff]  }
  0x1f   :  { %v1228_v13 = vld [vmem:[#allocation6 + $0x144] ss:$8 sps:$4 sm:$0xff]   ;;  %v1231_v15 = vld [vmem:[#allocation6 + $0x140] ss:$8 sps:$4 sm:$0xff]   ;;  %v1232_v16 = vld [vmem:[#allocation6 + $0x34] ss:$8 sps:$4 sm:$0xff]  }
  0x20   :  { %852 = vmatpush1.bf16.msra.mxu0 %v1218_v6  ;;  %v1234_v17 = vld [vmem:[#allocation6 + $0x134] ss:$8 sps:$4 sm:$0xff]   ;;  %v1236_v18 = vld [vmem:[#allocation6 + $0x30] ss:$8 sps:$4 sm:$0xff]   ;;  %v1238_v20 = vld [vmem:[#allocation6 + $0x24] ss:$8 sps:$4 sm:$0xff]  }
  0x21   :  { %893 = vmatpush1.bf16.msra.mxu1 %v1219_v7  ;;  %853 = vmatprep.subr.bf16.mxu0 %v1220_v8  ;;  %v1237_v19 = vld [vmem:[#allocation6 + $0x130] ss:$8 sps:$4 sm:$0xff]   ;;  %v1240_v21 = vld [vmem:[#allocation6 + $0x124] ss:$8 sps:$4 sm:$0xff]   ;;  %v1242_v22 = vld [vmem:[#allocation6 + $0x20] ss:$8 sps:$4 sm:$0xff]  }
  0x22   :  { %894 = vmatprep.subr.bf16.mxu1 %v1222_v9  ;;  %v1243_v23 = vld [vmem:[#allocation6 + $0x120] ss:$8 sps:$4 sm:$0xff]   ;;  %v1244_v24 = vld [vmem:[#allocation6 + $0x14] ss:$8 sps:$4 sm:$0xff]   ;;  %v1248_v26 = vld [vmem:[#allocation6 + $0x10] ss:$8 sps:$4 sm:$0xff]  }
  0x23   :  { %v1246_v25 = vld [vmem:[#allocation6 + $0x114] ss:$8 sps:$4 sm:$0xff]   ;;  %v1249_v27 = vld [vmem:[#allocation6 + $0x110] ss:$8 sps:$4 sm:$0xff]   ;;  %v1250_v28 = vld [vmem:[#allocation6 + $0x4] ss:$8 sps:$4 sm:$0xff]  }
  0x24   :  { %854 = vmatpush1.bf16.msra.mxu0 %v1224_v10  ;;  %v1252_v29 = vld [vmem:[#allocation6 + $0x104] ss:$8 sps:$4 sm:$0xff]   ;;  %v1254_v30 = vld [vmem:[#allocation6] ss:$8 sps:$4 sm:$0xff]   ;;  %v1256_v32 = vld [vmem:[#allocation6 + $0xf4] ss:$8 sps:$4 sm:$0xff]  }
  0x25   :  { %895 = vmatpush1.bf16.msra.mxu1 %v1225_v11  ;;  %855 = vmatprep.subr.bf16.mxu0 %v1226_v12  ;;  %v1255_v31 = vld [vmem:[#allocation6 + $0x100] ss:$8 sps:$4 sm:$0xff]   ;;  %v1258_v33 = vld [vmem:[#allocation6 + $0x1f4] ss:$8 sps:$4 sm:$0xff]   ;;  %v1260_v34 = vld [vmem:[#allocation6 + $0xf0] ss:$8 sps:$4 sm:$0xff]  }
  0x26   :  { %896 = vmatprep.subr.bf16.mxu1 %v1228_v13  ;;  %v1261_v35 = vld [vmem:[#allocation6 + $0x1f0] ss:$8 sps:$4 sm:$0xff]   ;;  %v1262_v36 = vld [vmem:[#allocation6 + $0xe4] ss:$8 sps:$4 sm:$0xff]   ;;  %v1266_v38 = vld [vmem:[#allocation6 + $0xe0] ss:$8 sps:$4 sm:$0xff]  }
  0x27   :  { %v1264_v37 = vld [vmem:[#allocation6 + $0x1e4] ss:$8 sps:$4 sm:$0xff]   ;;  %v1267_v39 = vld [vmem:[#allocation6 + $0x1e0] ss:$8 sps:$4 sm:$0xff]   ;;  %v1268_v40 = vld [vmem:[#allocation6 + $0xd4] ss:$8 sps:$4 sm:$0xff]  }
  0x28   :  { %856 = vmatpush1.bf16.msra.mxu0 %v1230_v14  ;;  %v1270_v41 = vld [vmem:[#allocation6 + $0x1d4] ss:$8 sps:$4 sm:$0xff]   ;;  %v1272_v42 = vld [vmem:[#allocation6 + $0xd0] ss:$8 sps:$4 sm:$0xff]   ;;  %v1274_v44 = vld [vmem:[#allocation6 + $0xc4] ss:$8 sps:$4 sm:$0xff]  }
  0x29   :  { %897 = vmatpush1.bf16.msra.mxu1 %v1231_v15  ;;  %857 = vmatprep.subr.bf16.mxu0 %v1232_v16  ;;  %v1273_v43 = vld [vmem:[#allocation6 + $0x1d0] ss:$8 sps:$4 sm:$0xff]   ;;  %v1276_v45 = vld [vmem:[#allocation6 + $0x1c4] ss:$8 sps:$4 sm:$0xff]   ;;  %v1278_v49 = vld [vmem:[#allocation6 + $0xc0] ss:$8 sps:$4 sm:$0xff]  }
  0x2a   :  { %898 = vmatprep.subr.bf16.mxu1 %v1234_v17  ;;  %v49_v46 = vld [vmem:[#allocation3] sm:$0xff]  ;;  %v50_v48 = vld [vmem:[#allocation3 + $0x8] sm:$0xff]  ;;  %v1280_v52 = vld [vmem:[#allocation6 + $0xb4] ss:$8 sps:$4 sm:$0xff]  }
  0x2b   :  { %v1068_v47 = vcombine.high %v49_v46, %v49_v46  ;;  %v1279_v50 = vld [vmem:[#allocation6 + $0x1c0] ss:$8 sps:$4 sm:$0xff]   ;;  %v1070_v51 = vcombine.high %v50_v48, %v50_v48  ;;  %v1282_v53 = vld [vmem:[#allocation6 + $0x1b4] ss:$8 sps:$4 sm:$0xff]   ;;  %v1284_v54 = vld [vmem:[#allocation6 + $0xb0] ss:$8 sps:$4 sm:$0xff]   ;;  %v1067_v6 = vcombine.low %v49_v46, %v49_v46  ;;  %v1069_v7 = vcombine.low %v50_v48, %v50_v48 }
  0x2c   :  { %858 = vmatpush1.bf16.msra.mxu0 %v1236_v18  ;;  %v1285_v55 = vld [vmem:[#allocation6 + $0x1b0] ss:$8 sps:$4 sm:$0xff]   ;;  %v1286_v56 = vld [vmem:[#allocation6 + $0xa4] ss:$8 sps:$4 sm:$0xff]   ;;  %v1290_v58 = vld [vmem:[#allocation6 + $0xa0] ss:$8 sps:$4 sm:$0xff]  }
  0x2d   :  { %899 = vmatpush1.bf16.msra.mxu1 %v1237_v19  ;;  %859 = vmatprep.subr.bf16.mxu0 %v1238_v20  ;;  %v1288_v57 = vld [vmem:[#allocation6 + $0x1a4] ss:$8 sps:$4 sm:$0xff]   ;;  %v1291_v59 = vld [vmem:[#allocation6 + $0x1a0] ss:$8 sps:$4 sm:$0xff]   ;;  %v1292_v60 = vld [vmem:[#allocation6 + $0x94] ss:$8 sps:$4 sm:$0xff]  }
  0x2e   :  { %900 = vmatprep.subr.bf16.mxu1 %v1240_v21  ;;  %881 = vmatprep.mubr.bf16.mxu0 %v1068_v47  ;;  %v1294_v61 = vld [vmem:[#allocation6 + $0x194] ss:$8 sps:$4 sm:$0xff]   ;;  %v1296_v62 = vld [vmem:[#allocation6 + $0x90] ss:$8 sps:$4 sm:$0xff]   ;;  %v1298_v0 = vld [vmem:[#allocation6 + $0x84] ss:$8 sps:$4 sm:$0xff]  }
  0x2f   :  { %922 = vmatprep.mubr.bf16.mxu1 %v1070_v51  ;;  %v1297_v63 = vld [vmem:[#allocation6 + $0x190] ss:$8 sps:$4 sm:$0xff]   ;;  %v1300_v1 = vld [vmem:[#allocation6 + $0x184] ss:$8 sps:$4 sm:$0xff]   ;;  %v1302_v2 = vld [vmem:[#allocation6 + $0x80] ss:$8 sps:$4 sm:$0xff]  }
  0x30   :  { %860 = vmatpush1.bf16.msra.mxu0 %v1242_v22  ;;  %v1303_v3 = vld [vmem:[#allocation6 + $0x180] ss:$8 sps:$4 sm:$0xff]   ;;  %v1310_v4 = vld [vmem:[#allocation6 + $0x274] ss:$8 sps:$4 sm:$0xff]   ;;  %v1308_v8 = vld [vmem:[#allocation6 + $0x270] ss:$8 sps:$4 sm:$0xff]  }
  0x31   :  { %901 = vmatpush1.bf16.msra.mxu1 %v1243_v23  ;;  %861 = vmatprep.subr.bf16.mxu0 %v1244_v24  ;;  %v1313_v5 = vld [vmem:[#allocation6 + $0x374] ss:$8 sps:$4 sm:$0xff]   ;;  %v1311_v9 = vld [vmem:[#allocation6 + $0x370] ss:$8 sps:$4 sm:$0xff]   ;;  %v1316_v10 = vld [vmem:[#allocation6 + $0x264] ss:$8 sps:$4 sm:$0xff]  }
  0x32   :  { %902 = vmatprep.subr.bf16.mxu1 %v1246_v25  ;;  %v1319_v11 = vld [vmem:[#allocation6 + $0x364] ss:$8 sps:$4 sm:$0xff]   ;;  %v1314_v12 = vld [vmem:[#allocation6 + $0x260] ss:$8 sps:$4 sm:$0xff]   ;;  %v1322_v14 = vld [vmem:[#allocation6 + $0x254] ss:$8 sps:$4 sm:$0xff]  }
  0x33   :  { %v1317_v13 = vld [vmem:[#allocation6 + $0x360] ss:$8 sps:$4 sm:$0xff]   ;;  %v1325_v15 = vld [vmem:[#allocation6 + $0x354] ss:$8 sps:$4 sm:$0xff]   ;;  %v1320_v16 = vld [vmem:[#allocation6 + $0x250] ss:$8 sps:$4 sm:$0xff]  }
  0x34   :  { %862 = vmatpush1.bf16.msra.mxu0 %v1248_v26  ;;  %v1323_v17 = vld [vmem:[#allocation6 + $0x350] ss:$8 sps:$4 sm:$0xff]   ;;  %v1328_v18 = vld [vmem:[#allocation6 + $0x244] ss:$8 sps:$4 sm:$0xff]   ;;  %v1326_v20 = vld [vmem:[#allocation6 + $0x240] ss:$8 sps:$4 sm:$0xff]  }
  0x35   :  { %903 = vmatpush1.bf16.msra.mxu1 %v1249_v27  ;;  %863 = vmatprep.subr.bf16.mxu0 %v1250_v28  ;;  %v1331_v19 = vld [vmem:[#allocation6 + $0x344] ss:$8 sps:$4 sm:$0xff]   ;;  %v1329_v21 = vld [vmem:[#allocation6 + $0x340] ss:$8 sps:$4 sm:$0xff]   ;;  %v1334_v22 = vld [vmem:[#allocation6 + $0x234] ss:$8 sps:$4 sm:$0xff]  }
  0x36   :  { %904 = vmatprep.subr.bf16.mxu1 %v1252_v29  ;;  %v1337_v23 = vld [vmem:[#allocation6 + $0x334] ss:$8 sps:$4 sm:$0xff]   ;;  %v1332_v24 = vld [vmem:[#allocation6 + $0x230] ss:$8 sps:$4 sm:$0xff]   ;;  %v1340_v26 = vld [vmem:[#allocation6 + $0x224] ss:$8 sps:$4 sm:$0xff]  }
  0x37   :  { %v1335_v25 = vld [vmem:[#allocation6 + $0x330] ss:$8 sps:$4 sm:$0xff]   ;;  %v1343_v27 = vld [vmem:[#allocation6 + $0x324] ss:$8 sps:$4 sm:$0xff]   ;;  %v1338_v28 = vld [vmem:[#allocation6 + $0x220] ss:$8 sps:$4 sm:$0xff]  }
  0x38   :  { %864 = vmatpush1.bf16.msra.mxu0 %v1254_v30  ;;  %v1341_v29 = vld [vmem:[#allocation6 + $0x320] ss:$8 sps:$4 sm:$0xff]   ;;  %v1346_v30 = vld [vmem:[#allocation6 + $0x214] ss:$8 sps:$4 sm:$0xff]   ;;  %v1364_v46 = vld [vmem:[#allocation6 + $0x2e4] ss:$8 sps:$4 sm:$0xff]  }
  0x39   :  { %905 = vmatpush1.bf16.msra.mxu1 %v1255_v31  ;;  %865 = vmatprep.subr.bf16.mxu0 %v1256_v32  ;;  %v1349_v31 = vld [vmem:[#allocation6 + $0x314] ss:$8 sps:$4 sm:$0xff]   ;;  %v1367_v47 = vld [vmem:[#allocation6 + $0x3e4] ss:$8 sps:$4 sm:$0xff]   ;;  %v1362_v48 = vld [vmem:[#allocation6 + $0x2e0] ss:$8 sps:$4 sm:$0xff]  }
  0x3a   :  { %906 = vmatprep.subr.bf16.mxu1 %v1258_v33  ;;  %v1509_v32 = vld [vmem:[#allocation3 + $0x10] sm:$0xff]  ;;  %v1511_v33 = vld [vmem:[#allocation3 + $0x18] sm:$0xff] }
  0x3b   :  { %v1373_v51 = vld [vmem:[#allocation6 + $0x3d4] ss:$8 sps:$4 sm:$0xff]  }
  0x3c   :  { %866 = vmatpush2.bf16.msra.mxu0 %v1260_v34  ;;  %v1072_v34 = vcombine.high %v1509_v32, %v1509_v32 }
  0x3d   :  { %907 = vmatpush2.bf16.msra.mxu1 %v1261_v35  ;;  %867 = vmatprep.subr.bf16.mxu0 %v1262_v36  ;;  %v1074_v35 = vcombine.high %v1511_v33, %v1511_v33  ;;  %v1344_v36 = vld [vmem:[#allocation6 + $0x210] ss:$8 sps:$4 sm:$0xff]  }
  0x3e   :  { %908 = vmatprep.subr.bf16.mxu1 %v1264_v37  ;;  %v1347_v37 = vld [vmem:[#allocation6 + $0x310] ss:$8 sps:$4 sm:$0xff]  }
  0x40   :  { %868 = vmatpush2.bf16.msra.mxu0 %v1266_v38  ;;  %v1352_v38 = vld [vmem:[#allocation6 + $0x204] ss:$8 sps:$4 sm:$0xff]  }
  0x41   :  { %909 = vmatpush2.bf16.msra.mxu1 %v1267_v39  ;;  %869 = vmatprep.subr.bf16.mxu0 %v1268_v40  ;;  %v1355_v39 = vld [vmem:[#allocation6 + $0x304] ss:$8 sps:$4 sm:$0xff]   ;;  %v1350_v40 = vld [vmem:[#allocation6 + $0x200] ss:$8 sps:$4 sm:$0xff]  }
  0x42   :  { %910 = vmatprep.subr.bf16.mxu1 %v1270_v41  ;;  %v1353_v41 = vld [vmem:[#allocation6 + $0x300] ss:$8 sps:$4 sm:$0xff]  }
  0x44   :  { %870 = vmatpush2.bf16.msra.mxu0 %v1272_v42  ;;  %v1358_v42 = vld [vmem:[#allocation6 + $0x2f4] ss:$8 sps:$4 sm:$0xff]  }
  0x45   :  { %911 = vmatpush2.bf16.msra.mxu1 %v1273_v43  ;;  %871 = vmatprep.subr.bf16.mxu0 %v1274_v44  ;;  %v1361_v43 = vld [vmem:[#allocation6 + $0x3f4] ss:$8 sps:$4 sm:$0xff]   ;;  %v1356_v44 = vld [vmem:[#allocation6 + $0x2f0] ss:$8 sps:$4 sm:$0xff]  }
  0x46   :  { %912 = vmatprep.subr.bf16.mxu1 %v1276_v45  ;;  %v1359_v45 = vld [vmem:[#allocation6 + $0x3f0] ss:$8 sps:$4 sm:$0xff]  }
  0x48   :  { %872 = vmatpush2.bf16.msra.mxu0 %v1278_v49  ;;  %v1365_v49 = vld [vmem:[#allocation6 + $0x3e0] ss:$8 sps:$4 sm:$0xff]  }
  0x49   :  { %913 = vmatpush2.bf16.msra.mxu1 %v1279_v50  ;;  %873 = vmatprep.subr.bf16.mxu0 %v1280_v52  ;;  %v1370_v50 = vld [vmem:[#allocation6 + $0x2d4] ss:$8 sps:$4 sm:$0xff]   ;;  %v1368_v52 = vld [vmem:[#allocation6 + $0x2d0] ss:$8 sps:$4 sm:$0xff]  }
  0x4a   :  { %914 = vmatprep.subr.bf16.mxu1 %v1282_v53  ;;  %v1371_v53 = vld [vmem:[#allocation6 + $0x3d0] ss:$8 sps:$4 sm:$0xff]  }
  0x4c   :  { %874 = vmatpush2.bf16.msra.mxu0 %v1284_v54  ;;  %v1376_v54 = vld [vmem:[#allocation6 + $0x2c4] ss:$8 sps:$4 sm:$0xff]  }
  0x4d   :  { %915 = vmatpush2.bf16.msra.mxu1 %v1285_v55  ;;  %875 = vmatprep.subr.bf16.mxu0 %v1286_v56  ;;  %v1379_v55 = vld [vmem:[#allocation6 + $0x3c4] ss:$8 sps:$4 sm:$0xff]   ;;  %v1374_v56 = vld [vmem:[#allocation6 + $0x2c0] ss:$8 sps:$4 sm:$0xff]  }
  0x4e   :  { %916 = vmatprep.subr.bf16.mxu1 %v1288_v57  ;;  %v1377_v57 = vld [vmem:[#allocation6 + $0x3c0] ss:$8 sps:$4 sm:$0xff]  }
  0x50   :  { %876 = vmatpush2.bf16.msra.mxu0 %v1290_v58  ;;  %v1382_v58 = vld [vmem:[#allocation6 + $0x2b4] ss:$8 sps:$4 sm:$0xff]  }
  0x51   :  { %917 = vmatpush2.bf16.msra.mxu1 %v1291_v59  ;;  %877 = vmatprep.subr.bf16.mxu0 %v1292_v60  ;;  %v1385_v59 = vld [vmem:[#allocation6 + $0x3b4] ss:$8 sps:$4 sm:$0xff]   ;;  %v1380_v60 = vld [vmem:[#allocation6 + $0x2b0] ss:$8 sps:$4 sm:$0xff]  }
  0x52   :  { %918 = vmatprep.subr.bf16.mxu1 %v1294_v61  ;;  %v1383_v61 = vld [vmem:[#allocation6 + $0x3b0] ss:$8 sps:$4 sm:$0xff]  }
  0x54   :  { %878 = vmatpush2.bf16.msra.mxu0 %v1296_v62  ;;  %v1388_v62 = vld [vmem:[#allocation6 + $0x2a4] ss:$8 sps:$4 sm:$0xff]  }
  0x55   :  { %919 = vmatpush2.bf16.msra.mxu1 %v1297_v63  ;;  %879 = vmatprep.subr.bf16.mxu0 %v1298_v0  ;;  %v1391_v63 = vld [vmem:[#allocation6 + $0x3a4] ss:$8 sps:$4 sm:$0xff]   ;;  %v1386_v0 = vld [vmem:[#allocation6 + $0x2a0] ss:$8 sps:$4 sm:$0xff]  }
  0x56   :  { %920 = vmatprep.subr.bf16.mxu1 %v1300_v1  ;;  %v1389_v1 = vld [vmem:[#allocation6 + $0x3a0] ss:$8 sps:$4 sm:$0xff]  }
  0x58   :  { %880 = vmatpush2.bf16.msra.mxu0 %v1302_v2  ;;  %v1394_v2 = vld [vmem:[#allocation6 + $0x294] ss:$8 sps:$4 sm:$0xff]  }
  0x59   :  { %921 = vmatpush2.bf16.msra.mxu1 %v1303_v3  ;;  %931 = vmatprep.subr.bf16.mxu0 %v1310_v4  ;;  %v1397_v3 = vld [vmem:[#allocation6 + $0x394] ss:$8 sps:$4 sm:$0xff]   ;;  %v1392_v4 = vld [vmem:[#allocation6 + $0x290] ss:$8 sps:$4 sm:$0xff]  }
  0x5a   :  { %972 = vmatprep.subr.bf16.mxu1 %v1313_v5  ;;  %v1395_v5 = vld [vmem:[#allocation6 + $0x390] ss:$8 sps:$4 sm:$0xff]  }
  0x5b   :  { %882 = vmatmul.mubr.bf16.vlgmr.msra.gmra.mxu0 %v1067_v6  ;;  %v1400_v6 = vld [vmem:[#allocation6 + $0x284] ss:$8 sps:$4 sm:$0xff]  }
  0x5c   :  { %923 = vmatmul.mubr.bf16.vlgmr.msra.gmra.mxu1 %v1069_v7  ;;  %932 = vmatpush1.bf16.msra.mxu0 %v1308_v8  ;;  %v1403_v7 = vld [vmem:[#allocation6 + $0x384] ss:$8 sps:$4 sm:$0xff]   ;;  %v1398_v8 = vld [vmem:[#allocation6 + $0x280] ss:$8 sps:$4 sm:$0xff]  }
  0x5d   :  { %973 = vmatpush1.bf16.msra.mxu1 %v1311_v9  ;;  %933 = vmatprep.subr.bf16.mxu0 %v1316_v10  ;;  %v1401_v9 = vld [vmem:[#allocation6 + $0x380] ss:$8 sps:$4 sm:$0xff]   ;;  %v1071_v10 = vcombine.low %v1509_v32, %v1509_v32 }
  0x5e   :  { %974 = vmatprep.subr.bf16.mxu1 %v1319_v11  ;;  %963 = vmatprep.mubr.bf16.mxu0 %v1072_v34  ;;  %v1073_v11 = vcombine.low %v1511_v33, %v1511_v33 }
  0x5f   :  { %1004 = vmatprep.mubr.bf16.mxu1 %v1074_v35 }
  0x60   :  { %934 = vmatpush1.bf16.msra.mxu0 %v1314_v12 }
  0x61   :  { %975 = vmatpush1.bf16.msra.mxu1 %v1317_v13  ;;  %935 = vmatprep.subr.bf16.mxu0 %v1322_v14 }
  0x62   :  { %976 = vmatprep.subr.bf16.mxu1 %v1325_v15 }
  0x64   :  { %936 = vmatpush1.bf16.msra.mxu0 %v1320_v16 }
  0x65   :  { %977 = vmatpush1.bf16.msra.mxu1 %v1323_v17  ;;  %937 = vmatprep.subr.bf16.mxu0 %v1328_v18 }
  0x66   :  { %978 = vmatprep.subr.bf16.mxu1 %v1331_v19 }
  0x68   :  { %938 = vmatpush1.bf16.msra.mxu0 %v1326_v20 }
  0x69   :  { %979 = vmatpush1.bf16.msra.mxu1 %v1329_v21  ;;  %939 = vmatprep.subr.bf16.mxu0 %v1334_v22  ;;  %v1024_v21 = vlaneseq }
  0x6a   :  { %980 = vmatprep.subr.bf16.mxu1 %v1337_v23 }
  0x6b   :  { %v1025_v22 = vshrl.u32 %v1024_v21, 7 }
  0x6c   :  { %940 = vmatpush1.bf16.msra.mxu0 %v1332_v24  ;;  %v1022_v24 = vld [vmem:[%s1529_s2] sm:$0x3]  ;;  %s1482_s2 = smov [#allocation8]  }
  0x6d   :  { %981 = vmatpush1.bf16.msra.mxu1 %v1335_v25  ;;  %941 = vmatprep.subr.bf16.mxu0 %v1340_v26  ;;  %v1026_v23 = vsub.s32 0, %v1025_v22  ;;  %v1030_v26 = vsub.s32 1, %v1025_v22  ;;  %s1057_s24 = sshll.u32 %s1482_s2, 4  ;;  %s1058_s24 = int_to_ptr.vmem [resolvable:$true] %s1057_s24 }
  0x6e   :  { %982 = vmatprep.subr.bf16.mxu1 %v1343_v27  ;;  %s1452_s25 = scalar_lea.vmem %s1058_s24, 128  ;;  %p1457_p11 = scmp.lt.s32.totalorder %s1058_s24, %s1058_s24 }
  0x6f   :  { %v1031_v35 = vrot.slane %v1022_v24, %v1030_v26  ;;  %p1453_p10 = scmp.ne.s32.totalorder %s1058_s24, %s1452_s25  ;;  %p1458_p12 = scmp.lt.s32.totalorder %s1452_s25, %s1452_s25 }
  0x70   :  { %942 = vmatpush1.bf16.msra.mxu0 %v1338_v28 }
  0x71   :  { %983 = vmatpush1.bf16.msra.mxu1 %v1341_v29  ;;  %943 = vmatprep.subr.bf16.mxu0 %v1346_v30  ;;  %v1027_v30 = vrot.slane %v1022_v24, %v1026_v23  ;;  %p1459_p13 = por %p1458_p12, %p1457_p11 }
  0x72   :  { %984 = vmatprep.subr.bf16.mxu1 %v1349_v31 }
  0x73   :  { %p1460_p0 = pnand %p1459_p13, %p1453_p10 }
  0x74   :  { %944 = vmatpush1.bf16.msra.mxu0 %v1344_v36 }
  0x75   :  { %985 = vmatpush1.bf16.msra.mxu1 %v1347_v37  ;;  %945 = vmatprep.subr.bf16.mxu0 %v1352_v38 }
  0x76   :  { %986 = vmatprep.subr.bf16.mxu1 %v1355_v39 }
  0x78   :  { %946 = vmatpush1.bf16.msra.mxu0 %v1350_v40 }
  0x79   :  { %987 = vmatpush1.bf16.msra.mxu1 %v1353_v41  ;;  %947 = vmatprep.subr.bf16.mxu0 %v1358_v42 }
  0x7a   :  { %988 = vmatprep.subr.bf16.mxu1 %v1361_v43 }
  0x7c   :  { %948 = vmatpush2.bf16.msra.mxu0 %v1356_v44 }
  0x7d   :  { %989 = vmatpush2.bf16.msra.mxu1 %v1359_v45  ;;  %949 = vmatprep.subr.bf16.mxu0 %v1364_v46 }
  0x7e   :  { %990 = vmatprep.subr.bf16.mxu1 %v1367_v47 }
  0x80   :  { %950 = vmatpush2.bf16.msra.mxu0 %v1362_v48 }
  0x81   :  { %991 = vmatpush2.bf16.msra.mxu1 %v1365_v49  ;;  %951 = vmatprep.subr.bf16.mxu0 %v1370_v50 }
  0x82   :  { %992 = vmatprep.subr.bf16.mxu1 %v1373_v51 }
  0x84   :  { %952 = vmatpush2.bf16.msra.mxu0 %v1368_v52 }
  0x85   :  { %993 = vmatpush2.bf16.msra.mxu1 %v1371_v53  ;;  %953 = vmatprep.subr.bf16.mxu0 %v1376_v54 }
  0x86   :  { %994 = vmatprep.subr.bf16.mxu1 %v1379_v55 }
  0x88   :  { %954 = vmatpush2.bf16.msra.mxu0 %v1374_v56 }
  0x89   :  { %995 = vmatpush2.bf16.msra.mxu1 %v1377_v57  ;;  %955 = vmatprep.subr.bf16.mxu0 %v1382_v58 }
  0x8a   :  { %996 = vmatprep.subr.bf16.mxu1 %v1385_v59 }
  0x8c   :  { %956 = vmatpush2.bf16.msra.mxu0 %v1380_v60 }
  0x8d   :  { %997 = vmatpush2.bf16.msra.mxu1 %v1383_v61  ;;  %957 = vmatprep.subr.bf16.mxu0 %v1388_v62 }
  0x8e   :  { %998 = vmatprep.subr.bf16.mxu1 %v1391_v63 }
  0x90   :  { %958 = vmatpush2.bf16.msra.mxu0 %v1386_v0 }
  0x91   :  { %999 = vmatpush2.bf16.msra.mxu1 %v1389_v1  ;;  %959 = vmatprep.subr.bf16.mxu0 %v1394_v2 }
  0x92   :  { %1000 = vmatprep.subr.bf16.mxu1 %v1397_v3 }
  0x94   :  { %960 = vmatpush2.bf16.msra.mxu0 %v1392_v4 }
  0x95   :  { %1001 = vmatpush2.bf16.msra.mxu1 %v1395_v5  ;;  %961 = vmatprep.subr.bf16.mxu0 %v1400_v6 }
  0x96   :  { %1002 = vmatprep.subr.bf16.mxu1 %v1403_v7 }
  0x98   :  { %962 = vmatpush2.bf16.msra.mxu0 %v1398_v8 }
  0x99   :  { %1003 = vmatpush2.bf16.msra.mxu1 %v1401_v9 }
  0x9b   :  { %964 = vmatmul.mubr.bf16.vlgmr.msra.gmra.mxu0 %v1071_v10 }
  0x9c   :  { %1005 = vmatmul.mubr.bf16.vlgmr.msra.gmra.mxu1 %v1073_v11 }
 0x11b   :  { %v883_v12 = vpop.f32.mrf.mxu0 }
 0x11c   :  { %v924_v13 = vpop.f32.mrf.mxu1 }
 0x11d   :  { %v885_v14 = vpop.f32.mrf.mxu0  ;;  %v925_v25 = vadd.f32 %v924_v13, %v883_v12 }
 0x11e   :  { %v926_v15 = vpop.f32.mrf.mxu1 }
 0x11f   :  { %v927_v16 = vadd.f32 %v926_v15, %v885_v14  ;;  %v887_v17 = vpop.f32.mrf.mxu0 }
 0x120   :  { %v928_v18 = vpop.f32.mrf.mxu1 }
 0x121   :  { %v888_v19 = vpop.f32.mrf.mxu0 }
 0x122   :  { %v929_v20 = vpop.f32.mrf.mxu1 }
 0x15b   :  { %v965_v27 = vpop.f32.mrf.mxu0 }
 0x15c   :  { %v1006_v28 = vpop.f32.mrf.mxu1  ;;  %v966_v29 = vadd.f32 %v965_v27, %v925_v25 }
 0x15d   :  { %v967_v31 = vpop.f32.mrf.mxu0 }
 0x15e   :  { %v1008_v32 = vpop.f32.mrf.mxu1  ;;  %v1007_v33 = vadd.f32 %v1006_v28, %v966_v29  ;;  %v968_v34 = vadd.f32 %v967_v31, %v927_v16 }
 0x15f   :  { %v969_v36 = vpop.f32.mrf.mxu0 }
 0x160   :  { %v1010_v37 = vpop.f32.mrf.mxu1  ;;  %v1009_v38 = vadd.f32 %v1008_v32, %v968_v34  ;;  %v1034_v39 = vadd.f32 %v1027_v30, %v1007_v33 }
 0x161   :  { %v970_v40 = vpop.f32.mrf.mxu0 }
 0x162   :  { %v1011_v41 = vpop.f32.mrf.mxu1  ;;  %v1035_v42 = vadd.f32 %v1031_v35, %v1009_v38  ;;  %v1036_v43 = vmul.f32 %v1034_v39, %v1034_v39 }
 0x164   :  { %1037 = vadd.xlane.f32.xlu0 %v1036_v43  ;;  %v1042_v44 = vmul.f32 %v1035_v42, %v1035_v42 }
 0x168   :  { %1043 = vadd.xlane.f32.xlu0 %v1042_v44 }
 0x1ed   :  { %v1038_v45 = vpop.xlane.xlu0 %1037 }
 0x1ee   :  { %v1039_v46 = vmax.f32 %v1038_v45, 1e-24 }
 0x1f0   :  { %1408 = vrsqrt.f32 %v1039_v46 }
 0x1f1   :  { %v1044_v47 = vpop.xlane.xlu0 %1043 }
 0x1f2   :  { %v1045_v48 = vmax.f32 %v1044_v47, 1e-24 }
 0x1f4   :  { %1410 = vrsqrt.f32 %v1045_v48 }
 0x1fd   :  { %v1409_v49 = vpop.eup %1408 }
 0x1fe   :  { %v1041_v51 = vmul.f32 %v1409_v49, %v1034_v39 }
 0x201   :  { %v1411_v50 = vpop.eup %1410 }
 0x202   :  { %v1047_v52 = vmul.f32 %v1411_v50, %v1035_v42 }
 0x204   :  { %v1048_v53 = vadd.f32 %v1047_v52, %v1041_v51 }
 0x206   :  { %v1049_v54 = vmul.f32 0.5, %v1048_v53 }
 0x208   :  { %1050 = vst [vmem:[#allocation8] sm:$0xff] %v1049_v54 }
 0x209   :  { %1463 = shalt.err (!%p1460_p0)
}
 0x20a   :  { %1060 = dma.vmem_to_hbm [thread:$0]  %s1058_s24, 128, %s1530_s3, [#allocation5]  }
 0x20b   :  { %1476 = dma.done.wait [#allocation5], 128  }
 0x20c   :  { %1477 = vsyncadd [#allocation5], 4294967168 }
 0x20d   :  { %1064 = vsyncpa [#allocation4], 1 }
 0x20e   :  { %1065 = vsyncpa [#allocation7], 1 }
 0x20f   :  { %1066 = vsyncpa [#allocation5], 1 }

</bundles_post_ra>
